<compile_context>
chip_gen: v5e
topology: v5e:2x2
jax: 0.10.0
libtpu: 0.0.40
codegen_flags: <defaults>
</compile_context>

<pallas_src>
import jax
import jax.numpy as jnp
from jax import lax
from jax.experimental import pallas as pl
from jax.experimental.pallas import tpu as pltpu

_HALO = 128                          # lane-aligned halo width; supports K - 1 <= 128
_DEF_VMEM_PHYS = 64 * 1024 * 1024    # conservative fallback (v7x per-TC VMEM)


def _round_up(a: int, b: int) -> int:
    return (a + b - 1) // b * b


def _cdiv(a: int, b: int) -> int:
    return -(-a // b)


def causal_conv_kernel(x_ref, halo_ref, w_ref, o_ref, xbuf):
    # x_ref:    (BT, C_in, TL)      current time tile (compute dtype)
    # halo_ref: (BT, C_in, 128)     first 128 columns of the next time tile
    # w_ref:    (K, C_out, C_in)    per-tap weights (compute dtype), grid-invariant
    # o_ref:    (BT, C_out, TL)
    # xbuf:     (C_in, TL + 128)    persistent VMEM staging slab
    bt, _, tl = x_ref.shape
    k = w_ref.shape[0]

    def per_batch(b, carry):
        # Stage the row slab once: two lane-aligned VMEM copies (TL % 128 == 0).
        xbuf[:, :tl] = x_ref[b]
        xbuf[:, tl:] = halo_ref[b]
        # K accumulating MXU dots with f32 accumulation.  Shifted views are static
        # lane slices of the staged slab — no im2col slab, no sublane concat.
        acc = jnp.dot(w_ref[0], xbuf[:, :tl], preferred_element_type=jnp.float32)
        for kk in range(1, k):
            acc = acc + jnp.dot(
                w_ref[kk], xbuf[:, kk:kk + tl], preferred_element_type=jnp.float32
            )
        o_ref[b] = acc.astype(o_ref.dtype)
        return carry

    lax.fori_loop(0, bt, per_batch, 0)


def causal_conv(
    x,
    w,
    *,
    max_time_tile: int = 16384,
    target_block_bytes: int | None = None,
    compute_dtype=jnp.bfloat16,
    out_dtype=None,
    crop: bool = True,
):
    """x: (N, C_in, L), w: (C_out, C_in, K) -> (N, C_out, L - K + 1)."""
    n, c_in, length = x.shape
    c_out, c_in_w, k = w.shape
    assert c_in == c_in_w
    assert length >= k
    assert k - 1 <= _HALO, "kernel_size - 1 must fit in the 128-wide halo"

    if out_dtype is None:
        out_dtype = compute_dtype          # bf16 writeback by default (review item)
    in_b = jnp.dtype(compute_dtype).itemsize
    out_b = jnp.dtype(out_dtype).itemsize

    l_out = length - k + 1

    # ---- generation-aware VMEM budget --------------------------------------
    try:
        vmem_phys = int(pltpu.get_tpu_info().vmem_capacity_bytes)
        if vmem_phys <= 0:
            vmem_phys = _DEF_VMEM_PHYS
    except Exception:
        vmem_phys = _DEF_VMEM_PHYS
    # 48 MiB on v7x (64 MiB physical), 96 MiB on v5e/v6e (128 MiB physical).
    vmem_limit = min((vmem_phys * 3) // 4, 96 * 1024 * 1024)
    budget = (vmem_limit * 7) // 10
    if target_block_bytes is None:
        # v7x HBM is ~2-3x faster -> aim for more bytes per step there.
        target_block_bytes = 4 * 1024 * 1024 if vmem_phys <= 64 * 1024 * 1024 else 2 * 1024 * 1024

    # Rough VMEM bytes per output column:
    #   scales with batch-per-block (double-buffered x tile + double-buffered out tile)
    per_col_bt = 2 * c_in * in_b + 2 * c_out * out_b
    #   fixed (staging slab + one shifted-view temp + f32 acc + cast temp)
    per_col_fix = 2 * c_in * in_b + c_out * 4 + c_out * out_b

    # ---- time tile: as large as budget / l_out allow, lane-aligned ---------
    tl = min(_round_up(max_time_tile, _HALO), _round_up(l_out, _HALO))
    tl_budget_cap = max(_HALO, (budget // (per_col_bt + per_col_fix)) // _HALO * _HALO)
    tl = min(tl, tl_budget_cap)
    n_t = _cdiv(l_out, tl)
    tl = _round_up(_cdiv(l_out, n_t), _HALO)   # even split -> minimal padded tail
    l_out_pad = n_t * tl

    # ---- batch-per-block: fold batch until the step is ~MB-sized -----------
    hbm_per_col = c_in * in_b + c_out * out_b
    bt = 1
    for d in range(1, n + 1):
        if n % d != 0:
            continue
        if tl * (d * per_col_bt + per_col_fix) > budget:
            break
        bt = d
        if d * tl * hbm_per_col >= target_block_bytes:
            break
    # Keep >= 2 grid steps when possible so both TensorCores (v7x) get work.
    if (n // bt) * n_t < 2 and bt % 2 == 0:
        bt //= 2

    # ---- single fused pad+cast HBM pass over the input ----------------------
    l_pad = n_t * tl + _HALO
    x_p = jnp.pad(x.astype(compute_dtype), ((0, 0), (0, 0), (0, l_pad - length)))
    # Per-tap weight (K, C_out, C_in): tiny, grid-invariant, stays VMEM-resident.
    w_t = jnp.transpose(w, (2, 0, 1)).astype(compute_dtype)

    halo_stride = tl // _HALO   # offset of tile t+1 in 128-wide blocks

    out = pl.pallas_call(
        causal_conv_kernel,
        out_shape=jax.ShapeDtypeStruct((n, c_out, l_out_pad), out_dtype),
        grid_spec=pltpu.PrefetchScalarGridSpec(
            num_scalar_prefetch=0,
            grid=(n // bt, n_t),
            in_specs=[
                # Main time tile.
                pl.BlockSpec((bt, c_in, tl), lambda b, t: (b, 0, t)),
                # 128-wide halo = start of the next tile (same array, 2nd view).
                pl.BlockSpec(
                    (bt, c_in, _HALO),
                    lambda b, t: (b, 0, (t + 1) * halo_stride),
                ),
                # Folded per-tap weight, grid-invariant.
                pl.BlockSpec((k, c_out, c_in), lambda b, t: (0, 0, 0)),
            ],
            out_specs=pl.BlockSpec((bt, c_out, tl), lambda b, t: (b, 0, t)),
            scratch_shapes=[pltpu.VMEM((c_in, tl + _HALO), compute_dtype)],
        ),
        compiler_params=pltpu.CompilerParams(
            dimension_semantics=("parallel", "parallel"),
            vmem_limit_bytes=int(vmem_limit),
        ),
    )(x_p, x_p, w_t)

    if not crop:
        return out              # padded (N, C_out, l_out_pad); crop lazily downstream
    return out if l_out_pad == l_out else out[:, :, :l_out]


def causal_conv_ref(x, w):
    """Pure-JAX reference: valid 1D conv, NCL / OIK layout (== torch Conv1d)."""
    return lax.conv_general_dilated(
        x, w,
        window_strides=(1,),
        padding="VALID",
        dimension_numbers=("NCH", "OIH", "NCH"),
    )


if __name__ == "__main__":
    # Module config: in_channels=4, res_channels=8, kernel_size=3
    batch, in_channels, res_channels, kernel_size, seq_len = 2, 4, 8, 3, 16

    key = jax.random.PRNGKey(0)
    kx, kw = jax.random.split(key)
    x = jax.random.normal(kx, (batch, in_channels, seq_len), dtype=jnp.float32)
    w = jax.random.normal(
        kw, (res_channels, in_channels, kernel_size), dtype=jnp.float32
    ) * 0.1

    y = jax.block_until_ready(causal_conv(x, w))

    # Reference on bf16-quantized inputs (kernel computes in bf16 with f32
    # accumulation and bf16 output writeback).
    xq = x.astype(jnp.bfloat16).astype(jnp.float32)
    wq = w.astype(jnp.bfloat16).astype(jnp.float32)
    y_ref = causal_conv_ref(xq, wq)

    assert y.shape == (batch, res_channels, seq_len - kernel_size + 1)
    y_f32 = y.astype(jnp.float32)
    assert jnp.allclose(y_f32, y_ref, atol=2e-2, rtol=2e-2), float(
        jnp.max(jnp.abs(y_f32 - y_ref))
    )

    print("KERNEL_OK")
</pallas_src>

<mosaic_0001>
module attributes {stable_mosaic.version = 11 : i64} {
  func.func @causal_conv_kernel(%arg0: i32, %arg1: i32, %arg2: memref<1x4x128xbf16, #tpu.memory_space<vmem>>, %arg3: memref<1x4x128xbf16, #tpu.memory_space<vmem>>, %arg4: memref<3x8x4xbf16, #tpu.memory_space<vmem>>, %arg5: memref<1x8x128xbf16, #tpu.memory_space<vmem>>, %arg6: memref<4x256xbf16, #tpu.memory_space<vmem>>) attributes {dimension_semantics = [#tpu.dimension_semantics<parallel>, #tpu.dimension_semantics<parallel>], iteration_bounds = array<i64: 2, 1>, scalar_prefetch = 0 : i64, scratch_operands = 1 : i64, tpu.core_type = #tpu.core_type<tc>, window_params = [{transform_indices = @transform_0, window_bounds = array<i64: 1, 4, 128>}, {transform_indices = @transform_1, window_bounds = array<i64: 1, 4, 128>}, {pipeline_mode = #tpu.pipeline_mode<synchronous>, transform_indices = @transform_2, window_bounds = array<i64: 3, 8, 4>}, {transform_indices = @transform_3, window_bounds = array<i64: 1, 8, 128>}]} {
    %c0_i32 = arith.constant 0 : i32
    %0 = arith.index_cast %c0_i32 : i32 to index
    %c0 = arith.constant 0 : index
    %c0_0 = arith.constant 0 : index
    %1 = vector.load %arg2[%0, %c0, %c0_0] : memref<1x4x128xbf16, #tpu.memory_space<vmem>>, vector<1x4x128xbf16>
    %2 = vector.shape_cast %1 : vector<1x4x128xbf16> to vector<4x128xbf16>
    %c0_1 = arith.constant 0 : index
    %c0_2 = arith.constant 0 : index
    %3 = vector.load %arg6[%c0_1, %c0_2] : memref<4x256xbf16, #tpu.memory_space<vmem>>, vector<4x128xbf16>
    tpu.vector_store %arg6[%c0_1, %c0_2], %2 {strides = array<i32>} : memref<4x256xbf16, #tpu.memory_space<vmem>>, vector<4x128xbf16>,
    %4 = arith.index_cast %c0_i32 : i32 to index
    %c0_3 = arith.constant 0 : index
    %c0_4 = arith.constant 0 : index
    %5 = vector.load %arg3[%4, %c0_3, %c0_4] : memref<1x4x128xbf16, #tpu.memory_space<vmem>>, vector<1x4x128xbf16>
    %6 = vector.shape_cast %5 : vector<1x4x128xbf16> to vector<4x128xbf16>
    %c0_5 = arith.constant 0 : index
    %c128 = arith.constant 128 : index
    %7 = vector.load %arg6[%c0_5, %c128] : memref<4x256xbf16, #tpu.memory_space<vmem>>, vector<4x128xbf16>
    tpu.vector_store %arg6[%c0_5, %c128], %6 {strides = array<i32>} : memref<4x256xbf16, #tpu.memory_space<vmem>>, vector<4x128xbf16>,
    %c0_6 = arith.constant 0 : index
    %c0_7 = arith.constant 0 : index
    %c0_8 = arith.constant 0 : index
    %8 = vector.load %arg4[%c0_6, %c0_7, %c0_8] : memref<3x8x4xbf16, #tpu.memory_space<vmem>>, vector<1x8x4xbf16>
    %9 = vector.shape_cast %8 : vector<1x8x4xbf16> to vector<8x4xbf16>
    %c0_9 = arith.constant 0 : index
    %c0_10 = arith.constant 0 : index
    %10 = vector.load %arg6[%c0_9, %c0_10] : memref<4x256xbf16, #tpu.memory_space<vmem>>, vector<4x128xbf16>
    %cst = arith.constant dense<0.000000e+00> : vector<8x128xf32>
    %11 = tpu.matmul %9, %10, %cst {dimension_numbers = #tpu.dot_dimension_numbers<[1], [0], [0], [1], [0, 0, 1, 1], [], []>} : vector<8x4xbf16>, vector<4x128xbf16>, vector<8x128xf32> -> vector<8x128xf32>
    %c1 = arith.constant 1 : index
    %c0_11 = arith.constant 0 : index
    %c0_12 = arith.constant 0 : index
    %12 = vector.load %arg4[%c1, %c0_11, %c0_12] : memref<3x8x4xbf16, #tpu.memory_space<vmem>>, vector<1x8x4xbf16>
    %13 = vector.shape_cast %12 : vector<1x8x4xbf16> to vector<8x4xbf16>
    %c0_13 = arith.constant 0 : index
    %c1_14 = arith.constant 1 : index
    %14 = vector.load %arg6[%c0_13, %c1_14] : memref<4x256xbf16, #tpu.memory_space<vmem>>, vector<4x128xbf16>
    %cst_15 = arith.constant dense<0.000000e+00> : vector<8x128xf32>
    %15 = tpu.matmul %13, %14, %cst_15 {dimension_numbers = #tpu.dot_dimension_numbers<[1], [0], [0], [1], [0, 0, 1, 1], [], []>} : vector<8x4xbf16>, vector<4x128xbf16>, vector<8x128xf32> -> vector<8x128xf32>
    %16 = arith.addf %11, %15 : vector<8x128xf32>
    %c2 = arith.constant 2 : index
    %c0_16 = arith.constant 0 : index
    %c0_17 = arith.constant 0 : index
    %17 = vector.load %arg4[%c2, %c0_16, %c0_17] : memref<3x8x4xbf16, #tpu.memory_space<vmem>>, vector<1x8x4xbf16>
    %18 = vector.shape_cast %17 : vector<1x8x4xbf16> to vector<8x4xbf16>
    %c0_18 = arith.constant 0 : index
    %c2_19 = arith.constant 2 : index
    %19 = vector.load %arg6[%c0_18, %c2_19] : memref<4x256xbf16, #tpu.memory_space<vmem>>, vector<4x128xbf16>
    %cst_20 = arith.constant dense<0.000000e+00> : vector<8x128xf32>
    %20 = tpu.matmul %18, %19, %cst_20 {dimension_numbers = #tpu.dot_dimension_numbers<[1], [0], [0], [1], [0, 0, 1, 1], [], []>} : vector<8x4xbf16>, vector<4x128xbf16>, vector<8x128xf32> -> vector<8x128xf32>
    %21 = arith.addf %16, %20 : vector<8x128xf32>
    %22 = arith.truncf %21 : vector<8x128xf32> to vector<8x128xbf16>
    %23 = arith.index_cast %c0_i32 : i32 to index
    %c0_21 = arith.constant 0 : index
    %c0_22 = arith.constant 0 : index
    %24 = vector.load %arg5[%23, %c0_21, %c0_22] : memref<1x8x128xbf16, #tpu.memory_space<vmem>>, vector<1x8x128xbf16>
    %25 = vector.shape_cast %24 : vector<1x8x128xbf16> to vector<8x128xbf16>
    %26 = vector.shape_cast %22 : vector<8x128xbf16> to vector<1x8x128xbf16>
    tpu.vector_store %arg5[%23, %c0_21, %c0_22], %26 {strides = array<i32>} : memref<1x8x128xbf16, #tpu.memory_space<vmem>>, vector<1x8x128xbf16>,
    %c1_i32 = arith.constant 1 : i32
    return
  }
  func.func @transform_0(%arg0: i32, %arg1: i32) -> (i32, i32, i32) {
    %c0_i32 = arith.constant 0 : i32
    %c0_i32_0 = arith.constant 0 : i32
    return %arg0, %c0_i32, %arg1 : i32, i32, i32
  }
  func.func @transform_1(%arg0: i32, %arg1: i32) -> (i32, i32, i32) {
    %c1_i32 = arith.constant 1 : i32
    %0 = arith.addi %arg1, %c1_i32 : i32
    %c1_i32_0 = arith.constant 1 : i32
    %1 = arith.muli %0, %c1_i32_0 : i32
    %c0_i32 = arith.constant 0 : i32
    %c0_i32_1 = arith.constant 0 : i32
    return %arg0, %c0_i32, %1 : i32, i32, i32
  }
  func.func @transform_2(%arg0: i32, %arg1: i32) -> (i32, i32, i32) {
    %c0_i32 = arith.constant 0 : i32
    %c0_i32_0 = arith.constant 0 : i32
    %c0_i32_1 = arith.constant 0 : i32
    %c0_i32_2 = arith.constant 0 : i32
    return %c0_i32, %c0_i32_0, %c0_i32_1 : i32, i32, i32
  }
  func.func @transform_3(%arg0: i32, %arg1: i32) -> (i32, i32, i32) {
    %c0_i32 = arith.constant 0 : i32
    %c0_i32_0 = arith.constant 0 : i32
    return %arg0, %c0_i32, %arg1 : i32, i32, i32
  }
}

</mosaic_0001>

<bundles_post_ra>
// kernel: tpu_custom_call.1
= control target key start
LH: loop header
LB: loop body
LE: loop exit
PB: predicated region body
PF: predicated region fallthrough
CT: control target
= control target key end

     0   :  { %8 = vsyncpa [#allocation4], 0  ;;  %s737_s0 = inlined_call_operand.vmem [shape: bf16[2,4,256], index: 0, kind: input, shape index: {}]   ;;  %s738_s1 = inlined_call_operand.vmem [shape: bf16[2,4,256], index: 1, kind: input, shape index: {}]   ;;  %s739_s2 = inlined_call_operand.vmem [shape: bf16[3,8,4], index: 2, kind: input, shape index: {}]   ;;  %s740_s3 = inlined_call_operand.hbm [shape: bf16[2,8,128], index: 3, kind: output, shape index: {}]  }
   0x1   :  { %10 = vsyncpa [#allocation4 + $0x1], 0  ;;  %s622_s12 = smov 0   ;;  %s624_s13 = smov 0  }
   0x2   :  { %s626_s14 = smov 0   ;;  %s628_s15 = smov 0  }
   0x3   :  { %s630_s16 = smov 0   ;;  %s632_s17 = smov 0  }
   0x4 LB: > { %s440_s18 = sadd.s32 4294967295, %s598_s17   ;;  %s441_s19 = sadd.s32 4294967294, %s598_s17   ;;  %s598_s17 = sphi %s632_s17, %s16_s17   ;;  %s594_s16 = sphi %s630_s16, %s747_s16   ;;  %s590_s15 = sphi %s628_s15, %s746_s15   ;;  %s586_s14 = sphi %s626_s14, %s745_s14   ;;  %s582_s13 = sphi %s624_s13, %s744_s13   ;;  %s578_s12 = sphi %s622_s12, %s743_s12  }
   0x5   : > { %s28_s20 = sadd.s32 1, %s594_s16  ;;  %s116_s21 = sadd.s32 1, %s586_s14 }
   0x6   : > { %p30_p0 = scmp.ge.s32.totalorder %s28_s20, 2  ;;  %p126_p1 = scmp.ne.s32.totalorder %s586_s14, %s582_s13 }
   0x7   : > { %p127_p2 = scmp.eq.s32.totalorder %s440_s18, 1  ;;  %p132_p3 = scmp.ne.s32.totalorder %s582_s13, %s578_s12 }
   0x8   : > { %s749_s20 = smov (%p30_p0, %s28_s20), 0  ;;  %p133_p5 = scmp.eq.s32.totalorder %s441_s19, 1 }
   0x9   : > { %p662_p4 = por %p127_p2, %p126_p1  ;;  %s111_s23 = ssub.s32 %s594_s16, %s749_s20 }
   0xa   : > { %p444_p6 = scmp.ge.s32.totalorder %s598_s17, 1  ;;  %p114_p7 = scmp.eq.s32.totalorder %s111_s23, 0 }
   0xb   : > { %p669_p8 = por %p133_p5, %p132_p3  ;;  %p178_p9 = scmp.lt.s32.totalorder %s598_s17, 3 }
   0xc   : > { %s675_s25 = scalar_select %p114_p7, %s586_s14, %s116_s21  }
   0xd   : > { %p179_p10 = pnand %p444_p6, %p178_p9 }
   0xe   : > { %p214_p11 = scmp.lt.s32.totalorder (!%p179_p10), %s590_s15, 1  ;;  %s600_s8 = smov (!%p179_p10), 127  }
   0xf   : > { %182 = sbr.rel (%p179_p10) target bundleno = 318 (0x13e), region = 32  ;;  %s601_s9 = smov (!%p179_p10), 126  }
  0x10   : > { %s456_s28 = sshll.u32 (!%p179_p10), %s590_s15, 2  ;;  %s540_s18 = scalar_lea.hbm (!%p179_p10), %s740_s3, 8 }
  0x14   : > { %s215_s26 = scalar_select %p214_p11, %s590_s15, 1  ;;  %vm258_vm0 = vcmask 1041408   ;;  %vm254_vm1 = vcmask 31744   ;;  %v237_v10 = vld [vmem:[%s739_s2] sm:$0xf]  ;;  %vm252_vm2 = vcmask 1039360  }
  0x15   : > { %v450_v16 = vld [vmem:[%s739_s2 + $0x4] sm:$0xf]  ;;  %vm307_vm3 = vcmask 1031168   ;;  %v453_v20 = vld [vmem:[%s739_s2 + $0x8] sm:$0xf] }
  0x16   : > { %s459_s27 = sshll.u32 %s215_s26, 2  ;;  %s211_s26 = sand.u32 1, %s582_s13  }
  0x17   : > { %s221_s30 = scalar_lea.vmem %s737_s0, %s459_s27  ;;  %s461_s4 = sadd.s32 2, %s459_s27 }
  0x18   : > { %s230_s7 = scalar_lea.vmem %s738_s1, %s461_s4  ;;  %v233_v0 = vld [vmem:[%s221_s30] sm:$0x3]  ;;  %s445_s27 = sshll.u32 %s211_s26, 2 }
  0x19   : > { %234 = vst [vmem:[#allocation2] sm:$0x3] %v233_v0  ;;  %v235_v1 = vld [vmem:[%s230_s7] sm:$0x3]  ;;  %s343_s4 = scalar_lea.hbm %s740_s3, %s456_s28  ;;  %s213_s5 = scalar_lea.vmem [#allocation3], %s445_s27 }
  0x1a   : > { %236 = vst [vmem:[#allocation2 + $0x2] sm:$0x3] %v235_v1  ;;  %s345_s6 = sshll.u32 %s213_s5, 4  ;;  %s347_s7 = sshll.u32 %s343_s4, 4  ;;  %s346_s6 = int_to_ptr.vmem [resolvable:$true] %s345_s6  ;;  %s348_s7 = int_to_ptr.hbm [resolvable:$true] %s347_s7 }
  0x20   : > { %v238_v8 = vld [vmem:[#allocation2] sm:$0x3] }
  0x21   : > { %v241_v2 = vld [vmem:[#allocation2] sm:$0xf]  ;;  %v279_v9 = vsel %vm258_vm0, %v238_v8, 0 }
  0x22   : > { %243 = vst [vmem:[#allocation1] ss:$4 sm:$0xff] %v241_v2  ;;  %v296_v3 = vld [vmem:[#allocation2] sm:$0xf]  ;;  %288 = vmatpush.bf16.msra.mxu1 %v279_v9 }
  0x25   : > { %452 = vmatmul.msk.bf16.vlgmr.msra.gmra.mxu1 %vm254_vm1, %v237_v10 }
  0x29   : > { %v244_v4 = vld.sshfl [vmem:[#allocation1] sm:$0xff pattern:$0x73625140]  ;;  %v246_v5 = vld.sshfl [vmem:[#allocation1 + $0x8] sm:$0xff pattern:$0x73625140] }
  0x2a   : > { %248 = vrot.lane.b32.xlu1 %v244_v4, %s600_s8  ;;  %298 = vst [vmem:[#allocation1] ss:$4 sm:$0xff] %v296_v3 }
  0x31   : > { %v299_v6 = vld.sshfl [vmem:[#allocation1] sm:$0xff pattern:$0x73625140]  ;;  %v301_v7 = vld.sshfl [vmem:[#allocation1 + $0x8] sm:$0xff pattern:$0x73625140] }
  0x32   : > { %303 = vrot.lane.b32.xlu0 %v299_v6, %s601_s9  ;;  %250 = vrot.lane.b32.xlu1 %v246_v5, %s600_s8  ;;  %s332_s8 = scalar_lea.sflag [#allocation4], %s211_s26 }
  0x3a   : > { %305 = vrot.lane.b32.xlu0 %v301_v7, %s601_s9  ;;  %s534_s9 = sshra.s32 %s348_s7, 4  ;;  %s535_s9 = int_to_ptr.hbm [resolvable:$true] %s534_s9 }
  0x3b   : > { %s536_s10 = scalar_lea.hbm %s535_s9, 4  ;;  %p541_p1 = scmp.lt.s32.totalorder %s535_s9, %s740_s3 }
  0x3c   : > { %p537_p12 = scmp.ne.s32.totalorder %s535_s9, %s536_s10  ;;  %p542_p2 = scmp.lt.s32.totalorder %s540_s18, %s536_s10 }
  0x3e   : > { %p538_p13 = pnand %p537_p12, %p662_p4  ;;  %p543_p3 = por %p542_p2, %p541_p1 }
  0x40   : > { %p539_p0 = pneg %p538_p13 }
  0x42   : > { %p544_p5 = pnand %p543_p3, %p539_p0 }
  0x9c   : > { %v249_v11 = vpop.permute.xlu1 %248 }
  0xa2   : > { %v290_v21 = vpop.f32.mrf.mxu1 }
  0xa4   : > { %v304_v12 = vpop.permute.xlu0 %303  ;;  %v251_v13 = vpop.permute.xlu1 %250 }
  0xa5   : > { %v253_v14 = vsel %vm252_vm2, %v249_v11, %v251_v13 }
  0xa6   : > { %v260_v15 = vsel %vm258_vm0, %v253_v14, 0 }
  0xa7   : > { %269 = vmatpush.bf16.msra.mxu0 %v260_v15 }
  0xaa   : > { %451 = vmatmul.msk.bf16.vlgmr.msra.gmra.mxu0 %vm254_vm1, %v450_v16  ;;  %v292_v22 = vpop.f32.mrf.mxu1 }
  0xac   : > { %v306_v17 = vpop.permute.xlu0 %305 }
  0xad   : > { %v308_v18 = vsel %vm307_vm3, %v304_v12, %v306_v17 }
  0xae   : > { %v313_v19 = vsel %vm258_vm0, %v308_v18, 0 }
  0xaf   : > { %322 = vmatpush.bf16.msra.mxu2 %v313_v19 }
  0xb2   : > { %454 = vmatmul.msk.bf16.vlgmr.msra.gmra.mxu2 %vm254_vm1, %v453_v20 }
 0x127   : > { %v271_v23 = vpop.f32.mrf.mxu0 }
 0x128   : > { %v291_v25 = vadd.f32 %v290_v21, %v271_v23 }
 0x12f   : > { %v273_v24 = vpop.f32.mrf.mxu0 }
 0x135   : > { %v324_v26 = vpop.f32.mrf.mxu2 }
 0x136   : > { %v328_v27 = vadd.f32 %v324_v26, %v291_v25 }
 0x138   : > { %v329_v28 = vpack.c.bf16 %v328_v27, %v328_v27 }
 0x13a   : > { %330 = vst [vmem:[%s213_s5] sm:$0xf] %v329_v28 }
 0x13b   : > { %547 = shalt.err (!%p544_p5)
}
 0x13c   : > { %463 = dma.vmem_to_hbm [thread:$0]  (%p662_p4), %s346_s6, 64, %s348_s7, %s332_s8  }
 0x13d   : > { %v326_v29 = vpop.f32.mrf.mxu2 }
 0x13e PF: > { %p469_p6 = scmp.ge.s32.totalorder %s598_s17, 2  ;;  %s359_s23 = sand.u32 1, %s578_s12  }
 0x13f   : > { %s360_s26 = scalar_lea.sflag [#allocation4], %s359_s23 }
 0x140   : > { %p466_p7 = pnand %p469_p6, %p669_p8 }
 0x142   : > { %p467_p9 = pneg %p466_p7 }
 0x144   : > { %573 = dma.done.wait (%p467_p9), %s360_s26, 64  }
 0x145   : > { %575 = vsyncadd (%p467_p9), %s360_s26, 4294967232  ;;  %s16_s17 = sadd.s32 1, %s598_s17   ;;  %s743_s12 = smov %s582_s13 }
 0x146   : > { %p13_p10 = scmp.ge.s32.totalorder %s16_s17, 4   ;;  %s744_s13 = smov %s586_s14 }
 0x147   : > { %s745_s14 = smov %s675_s25  ;;  %s746_s15 = smov %s594_s16 }
 0x148   : > { %s747_s16 = smov %s749_s20  ;;  %15 = sbr.rel (!%p13_p10) target bundleno = 4 (0x4), region = 72 }
 0x14d   :  { %366 = vsyncpa [#allocation4], 1 }
 0x14e   :  { %368 = vsyncpa [#allocation4 + $0x1], 1 }

</bundles_post_ra>
